<compile_context>
chip_gen: v6e
topology: v6e:2x2x1
jax: 0.10.0
libtpu: 0.0.40
codegen_flags: <defaults>
</compile_context>

<pallas_src>
import math

import jax
import jax.numpy as jnp
from jax.experimental import pallas as pl
from jax.experimental.pallas import tpu as pltpu

LANE = 128    # lane (last-dim) tile
SUBLANE = 8   # f32 sublane tile


def _cdiv(a, b):
    return -(-a // b)


def _round_up(x, m):
    return _cdiv(x, m) * m


# --------------------------------------------------------------------------
# Kernel: fc1 -> ReLU -> fc2 -> ReLU -> mean for one [TB, S] batch tile.
# --------------------------------------------------------------------------
def actor_kernel(state_ref, w1_ref, b1_ref, w2_ref, b2_ref, wm_ref, bm_ref,
                 mean_ref):
    x = state_ref[...].astype(w1_ref.dtype)                           # [TB, S]
    h1 = jnp.dot(x, w1_ref[...], preferred_element_type=jnp.float32)
    h1 = jnp.maximum(h1 + b1_ref[...], 0.0)                           # f32 [TB, Hp]
    h1 = h1.astype(w2_ref.dtype)
    h2 = jnp.dot(h1, w2_ref[...], preferred_element_type=jnp.float32)
    h2 = jnp.maximum(h2 + b2_ref[...], 0.0)                           # f32 [TB, Hp]
    h2 = h2.astype(wm_ref.dtype)
    m = jnp.dot(h2, wm_ref[...], preferred_element_type=jnp.float32)
    mean_ref[...] = (m + bm_ref[...]).astype(mean_ref.dtype)          # [TB, A]


# --------------------------------------------------------------------------
# One-time parameter preparation (hoisted out of the per-call wrapper).
# --------------------------------------------------------------------------
def prepare_actor_params(params, weight_dtype=jnp.bfloat16):
    """Pad the hidden dim to a multiple of 128 and cast weights once."""
    H = params["w1"].shape[1]
    H_p = _round_up(H, LANE)

    def pad_h(a, axes):
        pads = [(0, 0)] * a.ndim
        for ax in axes:
            pads[ax] = (0, H_p - a.shape[ax])
        if any(p != (0, 0) for p in pads):
            a = jnp.pad(a, pads)
        return a

    return {
        "w1": pad_h(params["w1"], (1,)).astype(weight_dtype),
        "b1": pad_h(params["b1"].reshape(1, -1), (1,)).astype(jnp.float32),
        "w2": pad_h(params["w2"], (0, 1)).astype(weight_dtype),
        "b2": pad_h(params["b2"].reshape(1, -1), (1,)).astype(jnp.float32),
        "w_mean": pad_h(params["w_mean"], (0,)).astype(weight_dtype),
        "b_mean": params["b_mean"].reshape(1, -1).astype(jnp.float32),
        "log_std": params["log_std"].astype(jnp.float32).reshape(-1),
    }


# --------------------------------------------------------------------------
# Forward wrapper.
# --------------------------------------------------------------------------
def actor_forward(state, kparams, *, block_b=2048):
    """Actor forward pass. Returns (mean [B, A], std [A]), both float32.

    `kparams` must come from prepare_actor_params (done once, not per call).
    """
    B, S = state.shape
    H_p = kparams["w1"].shape[1]
    A = kparams["w_mean"].shape[1]

    # Batch tiling: tiles <= block_b, at least 2 grid steps when splittable
    # (v7x megacore), tile chosen to minimize row padding.
    n_steps = _cdiv(B, block_b)
    if n_steps < 2 and B > SUBLANE:
        n_steps = 2
    TB = _round_up(_cdiv(B, n_steps), SUBLANE)
    B_p = _round_up(B, TB)

    state_p = state if B_p == B else jnp.pad(state, ((0, B_p - B), (0, 0)))

    flops = 2 * B_p * (S * H_p + H_p * H_p + H_p * A)
    bytes_accessed = (
        state_p.size * state_p.dtype.itemsize
        + sum(kparams[k].size * kparams[k].dtype.itemsize
              for k in ("w1", "b1", "w2", "b2", "w_mean", "b_mean"))
        + B_p * A * 4)

    full = lambda i: (0, 0)   # weights/biases: same VMEM-resident block each step

    mean_p = pl.pallas_call(
        actor_kernel,
        out_shape=jax.ShapeDtypeStruct((B_p, A), jnp.float32),
        grid=(B_p // TB,),
        in_specs=[
            pl.BlockSpec((TB, S), lambda i: (i, 0)),   # state tile (pipelined)
            pl.BlockSpec((S, H_p), full),              # w1
            pl.BlockSpec((1, H_p), full),              # b1
            pl.BlockSpec((H_p, H_p), full),            # w2
            pl.BlockSpec((1, H_p), full),              # b2
            pl.BlockSpec((H_p, A), full),              # w_mean
            pl.BlockSpec((1, A), full),                # b_mean
        ],
        out_specs=pl.BlockSpec((TB, A), lambda i: (i, 0)),
        compiler_params=pltpu.CompilerParams(
            dimension_semantics=("parallel",),
            vmem_limit_bytes=32 * 1024 * 1024),
        cost_estimate=pl.CostEstimate(
            flops=flops, transcendentals=0, bytes_accessed=bytes_accessed),
    )(state_p, kparams["w1"], kparams["b1"], kparams["w2"], kparams["b2"],
      kparams["w_mean"], kparams["b_mean"])

    mean = mean_p if B_p == B else mean_p[:B]
    # std = exp(log_std) is batch-independent: computed outside the kernel.
    std = jnp.exp(kparams["log_std"])
    return mean, std


# --------------------------------------------------------------------------
# Init + pure-JAX reference.
# --------------------------------------------------------------------------
def init_actor_params(key, state_dim, action_dim, hidden_dim=256):
    """f32 logical params mimicking nn.Linear default init."""
    ks = jax.random.split(key, 6)

    def linear(kw, kb, fan_in, fan_out):
        bound = 1.0 / math.sqrt(fan_in)
        w = jax.random.uniform(kw, (fan_in, fan_out), jnp.float32, -bound, bound)
        b = jax.random.uniform(kb, (1, fan_out), jnp.float32, -bound, bound)
        return w, b

    w1, b1 = linear(ks[0], ks[1], state_dim, hidden_dim)
    w2, b2 = linear(ks[2], ks[3], hidden_dim, hidden_dim)
    wm, bm = linear(ks[4], ks[5], hidden_dim, action_dim)
    log_std = jnp.zeros((action_dim,), jnp.float32)  # nn.Parameter(torch.zeros(A))
    return {"w1": w1, "b1": b1, "w2": w2, "b2": b2,
            "w_mean": wm, "b_mean": bm, "log_std": log_std}


def actor_forward_ref(state, params):
    """Pure-JAX f32 reference for correctness checking."""
    f32 = lambda a: a.astype(jnp.float32)
    h1 = jnp.maximum(state @ f32(params["w1"]) + f32(params["b1"]), 0.0)
    h2 = jnp.maximum(h1 @ f32(params["w2"]) + f32(params["b2"]), 0.0)
    mean = h2 @ f32(params["w_mean"]) + f32(params["b_mean"])
    std = jnp.exp(f32(params["log_std"])).reshape(-1)
    return mean, std


if __name__ == "__main__":
    key = jax.random.PRNGKey(0)
    k_param, k_state, k_state2 = jax.random.split(key, 3)

    # Small shapes consistent with the module (hidden_dim=256 is its default).
    batch, state_dim, action_dim, hidden_dim = 2, 8, 4, 256

    params = init_actor_params(k_param, state_dim, action_dim, hidden_dim)
    state = jax.random.normal(k_state, (batch, state_dim), jnp.float32)

    # --- f32 weights, tight tolerance ---
    kp_f32 = prepare_actor_params(params, weight_dtype=jnp.float32)
    mean, std = actor_forward(state, kp_f32)
    jax.block_until_ready((mean, std))
    mean_ref, std_ref = actor_forward_ref(state, params)
    assert mean.shape == (batch, action_dim)
    assert std.shape == (action_dim,)
    assert jnp.allclose(mean, mean_ref, atol=1e-5, rtol=1e-5)
    assert jnp.allclose(std, std_ref, atol=1e-6, rtol=1e-6)

    # --- multi-step grid path (batch not a multiple of the tile) ---
    state2 = jax.random.normal(k_state2, (37, state_dim), jnp.float32)
    mean2, _ = actor_forward(state2, kp_f32, block_b=16)
    jax.block_until_ready(mean2)
    mean2_ref, _ = actor_forward_ref(state2, params)
    assert mean2.shape == (37, action_dim)
    assert jnp.allclose(mean2, mean2_ref, atol=1e-5, rtol=1e-5)

    # --- bf16 weights (default): matmul inputs quantized to bf16, f32 accum ---
    kp_bf16 = prepare_actor_params(params)  # weight_dtype defaults to bfloat16
    mean_b, std_b = actor_forward(state, kp_bf16)
    jax.block_until_ready((mean_b, std_b))
    params_bf16 = dict(params, **{k: params[k].astype(jnp.bfloat16)
                                  for k in ("w1", "w2", "w_mean")})
    mean_b_ref, _ = actor_forward_ref(state, params_bf16)
    assert jnp.allclose(mean_b, mean_b_ref, atol=5e-2, rtol=5e-2)
    assert jnp.allclose(std_b, std_ref, atol=1e-6, rtol=1e-6)

    print("KERNEL_OK")
</pallas_src>

<mosaic_0001>
module attributes {stable_mosaic.version = 11 : i64} {
  func.func @actor_kernel(%arg0: i32, %arg1: memref<8x8xf32, #tpu.memory_space<vmem>>, %arg2: memref<8x256xf32, #tpu.memory_space<vmem>>, %arg3: memref<1x256xf32, #tpu.memory_space<vmem>>, %arg4: memref<256x256xf32, #tpu.memory_space<vmem>>, %arg5: memref<1x256xf32, #tpu.memory_space<vmem>>, %arg6: memref<256x4xf32, #tpu.memory_space<vmem>>, %arg7: memref<1x4xf32, #tpu.memory_space<vmem>>, %arg8: memref<8x4xf32, #tpu.memory_space<vmem>>) attributes {dimension_semantics = [#tpu.dimension_semantics<parallel>], iteration_bounds = array<i64: 1>, scalar_prefetch = 0 : i64, scratch_operands = 0 : i64, tpu.core_type = #tpu.core_type<tc>, window_params = [{transform_indices = @transform_0, window_bounds = array<i64: 8, 8>}, {pipeline_mode = #tpu.pipeline_mode<synchronous>, transform_indices = @transform_1, window_bounds = array<i64: 8, 256>}, {pipeline_mode = #tpu.pipeline_mode<synchronous>, transform_indices = @transform_2, window_bounds = array<i64: 1, 256>}, {pipeline_mode = #tpu.pipeline_mode<synchronous>, transform_indices = @transform_3, window_bounds = array<i64: 256, 256>}, {pipeline_mode = #tpu.pipeline_mode<synchronous>, transform_indices = @transform_4, window_bounds = array<i64: 1, 256>}, {pipeline_mode = #tpu.pipeline_mode<synchronous>, transform_indices = @transform_5, window_bounds = array<i64: 256, 4>}, {pipeline_mode = #tpu.pipeline_mode<synchronous>, transform_indices = @transform_6, window_bounds = array<i64: 1, 4>}, {transform_indices = @transform_7, window_bounds = array<i64: 8, 4>}]} {
    %c0 = arith.constant 0 : index
    %c0_0 = arith.constant 0 : index
    %0 = vector.load %arg1[%c0, %c0_0] : memref<8x8xf32, #tpu.memory_space<vmem>>, vector<8x8xf32>
    %c0_1 = arith.constant 0 : index
    %c0_2 = arith.constant 0 : index
    %1 = vector.load %arg2[%c0_1, %c0_2] : memref<8x256xf32, #tpu.memory_space<vmem>>, vector<8x256xf32>
    %cst = arith.constant dense<0.000000e+00> : vector<8x256xf32>
    %2 = tpu.matmul %0, %1, %cst {dimension_numbers = #tpu.dot_dimension_numbers<[1], [0], [0], [1], [0, 0, 1, 1], [], []>} : vector<8x8xf32>, vector<8x256xf32>, vector<8x256xf32> -> vector<8x256xf32>
    %c0_3 = arith.constant 0 : index
    %c0_4 = arith.constant 0 : index
    %3 = vector.load %arg3[%c0_3, %c0_4] : memref<1x256xf32, #tpu.memory_space<vmem>>, vector<1x256xf32>
    %4 = vector.broadcast %3 : vector<1x256xf32> to vector<8x256xf32>
    %5 = arith.addf %2, %4 : vector<8x256xf32>
    %cst_5 = arith.constant 0.000000e+00 : f32
    %6 = vector.broadcast %cst_5 : f32 to vector<8x256xf32>
    %7 = arith.maximumf %5, %6 : vector<8x256xf32>
    %c0_6 = arith.constant 0 : index
    %c0_7 = arith.constant 0 : index
    %8 = vector.load %arg4[%c0_6, %c0_7] : memref<256x256xf32, #tpu.memory_space<vmem>>, vector<256x256xf32>
    %cst_8 = arith.constant dense<0.000000e+00> : vector<8x256xf32>
    %9 = tpu.matmul %7, %8, %cst_8 {dimension_numbers = #tpu.dot_dimension_numbers<[1], [0], [0], [1], [0, 0, 1, 1], [], []>} : vector<8x256xf32>, vector<256x256xf32>, vector<8x256xf32> -> vector<8x256xf32>
    %c0_9 = arith.constant 0 : index
    %c0_10 = arith.constant 0 : index
    %10 = vector.load %arg5[%c0_9, %c0_10] : memref<1x256xf32, #tpu.memory_space<vmem>>, vector<1x256xf32>
    %11 = vector.broadcast %10 : vector<1x256xf32> to vector<8x256xf32>
    %12 = arith.addf %9, %11 : vector<8x256xf32>
    %cst_11 = arith.constant 0.000000e+00 : f32
    %13 = vector.broadcast %cst_11 : f32 to vector<8x256xf32>
    %14 = arith.maximumf %12, %13 : vector<8x256xf32>
    %c0_12 = arith.constant 0 : index
    %c0_13 = arith.constant 0 : index
    %15 = vector.load %arg6[%c0_12, %c0_13] : memref<256x4xf32, #tpu.memory_space<vmem>>, vector<256x4xf32>
    %cst_14 = arith.constant dense<0.000000e+00> : vector<8x4xf32>
    %16 = tpu.matmul %14, %15, %cst_14 {dimension_numbers = #tpu.dot_dimension_numbers<[1], [0], [0], [1], [0, 0, 1, 1], [], []>} : vector<8x256xf32>, vector<256x4xf32>, vector<8x4xf32> -> vector<8x4xf32>
    %c0_15 = arith.constant 0 : index
    %c0_16 = arith.constant 0 : index
    %17 = vector.load %arg7[%c0_15, %c0_16] : memref<1x4xf32, #tpu.memory_space<vmem>>, vector<1x4xf32>
    %18 = vector.broadcast %17 : vector<1x4xf32> to vector<8x4xf32>
    %19 = arith.addf %16, %18 : vector<8x4xf32>
    %c0_17 = arith.constant 0 : index
    %c0_18 = arith.constant 0 : index
    %20 = vector.load %arg8[%c0_17, %c0_18] : memref<8x4xf32, #tpu.memory_space<vmem>>, vector<8x4xf32>
    tpu.vector_store %arg8[%c0_17, %c0_18], %19 {strides = array<i32>} : memref<8x4xf32, #tpu.memory_space<vmem>>, vector<8x4xf32>,
    return
  }
  func.func @transform_0(%arg0: i32) -> (i32, i32) {
    %c0_i32 = arith.constant 0 : i32
    %c0_i32_0 = arith.constant 0 : i32
    return %arg0, %c0_i32 : i32, i32
  }
  func.func @transform_1(%arg0: i32) -> (i32, i32) {
    %c0_i32 = arith.constant 0 : i32
    %c0_i32_0 = arith.constant 0 : i32
    %c0_i32_1 = arith.constant 0 : i32
    return %c0_i32, %c0_i32_0 : i32, i32
  }
  func.func @transform_2(%arg0: i32) -> (i32, i32) {
    %c0_i32 = arith.constant 0 : i32
    %c0_i32_0 = arith.constant 0 : i32
    %c0_i32_1 = arith.constant 0 : i32
    return %c0_i32, %c0_i32_0 : i32, i32
  }
  func.func @transform_3(%arg0: i32) -> (i32, i32) {
    %c0_i32 = arith.constant 0 : i32
    %c0_i32_0 = arith.constant 0 : i32
    %c0_i32_1 = arith.constant 0 : i32
    return %c0_i32, %c0_i32_0 : i32, i32
  }
  func.func @transform_4(%arg0: i32) -> (i32, i32) {
    %c0_i32 = arith.constant 0 : i32
    %c0_i32_0 = arith.constant 0 : i32
    %c0_i32_1 = arith.constant 0 : i32
    return %c0_i32, %c0_i32_0 : i32, i32
  }
  func.func @transform_5(%arg0: i32) -> (i32, i32) {
    %c0_i32 = arith.constant 0 : i32
    %c0_i32_0 = arith.constant 0 : i32
    %c0_i32_1 = arith.constant 0 : i32
    return %c0_i32, %c0_i32_0 : i32, i32
  }
  func.func @transform_6(%arg0: i32) -> (i32, i32) {
    %c0_i32 = arith.constant 0 : i32
    %c0_i32_0 = arith.constant 0 : i32
    %c0_i32_1 = arith.constant 0 : i32
    return %c0_i32, %c0_i32_0 : i32, i32
  }
  func.func @transform_7(%arg0: i32) -> (i32, i32) {
    %c0_i32 = arith.constant 0 : i32
    %c0_i32_0 = arith.constant 0 : i32
    return %arg0, %c0_i32 : i32, i32
  }
}

</mosaic_0001>

<bundles_post_ra>
// kernel: tpu_custom_call.1
= control target key start
LH: loop header
LB: loop body
LE: loop exit
PB: predicated region body
PF: predicated region fallthrough
CT: control target
= control target key end

     0   :  { %12 = vsyncpa [#allocation3], 0  ;;  %s460_s24 = smov [#allocation2]   ;;  %s624_s0 = inlined_call_operand.vmem [shape: f32[8,8], index: 0, kind: input, shape index: {}]   ;;  %s625_s1 = inlined_call_operand.vmem [shape: f32[8,256], index: 1, kind: input, shape index: {}]   ;;  %s626_s2 = inlined_call_operand.vmem [shape: f32[1,256], index: 2, kind: input, shape index: {}]   ;;  %s627_s3 = inlined_call_operand.hbm [shape: f32[256,256], index: 3, kind: input, shape index: {}]   ;;  %s628_s4 = inlined_call_operand.vmem [shape: f32[1,256], index: 4, kind: input, shape index: {}]   ;;  %s629_s5 = inlined_call_operand.vmem [shape: f32[256,4], index: 5, kind: input, shape index: {}]   ;;  %s630_s6 = inlined_call_operand.vmem [shape: f32[1,4], index: 6, kind: input, shape index: {}]   ;;  %s631_s7 = inlined_call_operand.vmem [shape: f32[8,4], index: 7, kind: output, shape index: {}]  }
   0x1   :  { %s24_s25 = sshll.u32 %s460_s24, 4  ;;  %s25_s25 = int_to_ptr.vmem [resolvable:$true] %s24_s25 }
   0x2   :  { %s446_s26 = scalar_lea.vmem %s25_s25, 8192  ;;  %p451_p1 = scmp.lt.s32.totalorder %s25_s25, %s25_s25 }
   0x3   :  { %p447_p0 = scmp.ne.s32.totalorder %s25_s25, %s446_s26  ;;  %p452_p2 = scmp.lt.s32.totalorder %s446_s26, %s446_s26 }
   0x5   :  { %p453_p3 = por %p452_p2, %p451_p1 }
   0x7   :  { %p454_p4 = pnand %p453_p3, %p447_p0 }
   0x9   :  { %457 = shalt.err (!%p454_p4)
}
   0xa   :  { %s461_s27 = smov 256   ;;  %s462_s28 = smov 16  }
   0xb   :  { %30 = dma.hbm_to_vmem [thread:$0]  %s627_s3, 8192, %s25_s25, [#allocation3], %s461_s27, %s461_s27, %s462_s28  }
   0xc   :  { %458 = dma.done.wait [#allocation3], 8192  }
   0xd   :  { %459 = vsyncadd [#allocation3], 4294959104  ;;  %v463_v0 = vmov 0.0   ;;  %v42_v1 = vld [vmem:[%s625_s1 + $0x8] sm:$0xff]  ;;  %v41_v2 = vld [vmem:[%s625_s1] sm:$0xff]  ;;  %vm55_vm0 = vcmask 64512  }
   0xe   :  { %123 = vmatprep.mubr.f32.mxu0 %v463_v0  ;;  %v40_v3 = vld [vmem:[%s624_s0] sm:$0xff]  ;;  %89 = vmatprep.subr.mxu0 %v42_v1  ;;  %v163_v4 = vld [vmem:[#allocation2 + $0xf8] sm:$0xff]  ;;  %v162_v5 = vld [vmem:[#allocation2 + $0xf0] sm:$0xff]  ;;  %vm390_vm1 = vcmask 31744  }
   0xf   :  { %v161_v6 = vld [vmem:[#allocation2 + $0xe8] sm:$0xff]  ;;  %90 = vmatpush1.msra.mxu0 %v41_v2  ;;  %208 = vmatprep.subr.mxu1 %v163_v4  ;;  %v160_v7 = vld [vmem:[#allocation2 + $0xe0] sm:$0xff]  ;;  %v159_v8 = vld [vmem:[#allocation2 + $0xd8] sm:$0xff] }
  0x10   :  { %397 = vmatmul.mubr.msk.f32.vlgmr.msra.gmra.mxu0 %vm55_vm0, %v40_v3  ;;  %209 = vmatpush1.msra.mxu1 %v162_v5  ;;  %v158_v9 = vld [vmem:[#allocation2 + $0xd0] sm:$0xff]  ;;  %v157_v10 = vld [vmem:[#allocation2 + $0xc8] sm:$0xff]  ;;  %v156_v11 = vld [vmem:[#allocation2 + $0xc0] sm:$0xff] }
  0x11   :  { %210 = vmatprep.subr.mxu1 %v161_v6  ;;  %v155_v12 = vld [vmem:[#allocation2 + $0xb8] sm:$0xff]  ;;  %v154_v13 = vld [vmem:[#allocation2 + $0xb0] sm:$0xff]  ;;  %v153_v14 = vld [vmem:[#allocation2 + $0xa8] sm:$0xff] }
  0x12   :  { %211 = vmatpush1.msra.mxu1 %v160_v7  ;;  %v152_v15 = vld [vmem:[#allocation2 + $0xa0] sm:$0xff]  ;;  %v151_v16 = vld [vmem:[#allocation2 + $0x98] sm:$0xff]  ;;  %v150_v17 = vld [vmem:[#allocation2 + $0x90] sm:$0xff] }
  0x13   :  { %212 = vmatprep.subr.mxu1 %v159_v8  ;;  %v149_v18 = vld [vmem:[#allocation2 + $0x88] sm:$0xff]  ;;  %v148_v19 = vld [vmem:[#allocation2 + $0x80] sm:$0xff]  ;;  %v147_v20 = vld [vmem:[#allocation2 + $0x78] sm:$0xff] }
  0x14   :  { %213 = vmatpush1.msra.mxu1 %v158_v9  ;;  %v146_v21 = vld [vmem:[#allocation2 + $0x70] sm:$0xff]  ;;  %v145_v22 = vld [vmem:[#allocation2 + $0x68] sm:$0xff]  ;;  %v144_v23 = vld [vmem:[#allocation2 + $0x60] sm:$0xff] }
  0x15   :  { %214 = vmatprep.subr.mxu1 %v157_v10  ;;  %v143_v24 = vld [vmem:[#allocation2 + $0x58] sm:$0xff]  ;;  %v142_v25 = vld [vmem:[#allocation2 + $0x50] sm:$0xff]  ;;  %v141_v26 = vld [vmem:[#allocation2 + $0x48] sm:$0xff] }
  0x16   :  { %215 = vmatpush1.msra.mxu1 %v156_v11  ;;  %v140_v27 = vld [vmem:[#allocation2 + $0x40] sm:$0xff]  ;;  %v139_v28 = vld [vmem:[#allocation2 + $0x38] sm:$0xff]  ;;  %v138_v29 = vld [vmem:[#allocation2 + $0x30] sm:$0xff] }
  0x17   :  { %216 = vmatprep.subr.mxu1 %v155_v12  ;;  %v137_v30 = vld [vmem:[#allocation2 + $0x28] sm:$0xff]  ;;  %v136_v31 = vld [vmem:[#allocation2 + $0x20] sm:$0xff]  ;;  %v135_v32 = vld [vmem:[#allocation2 + $0x18] sm:$0xff] }
  0x18   :  { %217 = vmatpush1.msra.mxu1 %v154_v13  ;;  %v134_v33 = vld [vmem:[#allocation2 + $0x10] sm:$0xff]  ;;  %v133_v34 = vld [vmem:[#allocation2 + $0x8] sm:$0xff]  ;;  %v132_v35 = vld [vmem:[#allocation2] sm:$0xff] }
  0x19   :  { %218 = vmatprep.subr.mxu1 %v153_v14  ;;  %v195_v36 = vld [vmem:[#allocation2 + $0x1f8] sm:$0xff]  ;;  %v194_v37 = vld [vmem:[#allocation2 + $0x1f0] sm:$0xff]  ;;  %v193_v38 = vld [vmem:[#allocation2 + $0x1e8] sm:$0xff] }
  0x1a   :  { %219 = vmatpush1.msra.mxu1 %v152_v15  ;;  %v192_v39 = vld [vmem:[#allocation2 + $0x1e0] sm:$0xff]  ;;  %v191_v40 = vld [vmem:[#allocation2 + $0x1d8] sm:$0xff]  ;;  %v190_v41 = vld [vmem:[#allocation2 + $0x1d0] sm:$0xff] }
  0x1b   :  { %220 = vmatprep.subr.mxu1 %v151_v16  ;;  %v189_v42 = vld [vmem:[#allocation2 + $0x1c8] sm:$0xff]  ;;  %v188_v43 = vld [vmem:[#allocation2 + $0x1c0] sm:$0xff]  ;;  %v187_v44 = vld [vmem:[#allocation2 + $0x1b8] sm:$0xff] }
  0x1c   :  { %221 = vmatpush1.msra.mxu1 %v150_v17  ;;  %v186_v45 = vld [vmem:[#allocation2 + $0x1b0] sm:$0xff]  ;;  %v185_v46 = vld [vmem:[#allocation2 + $0x1a8] sm:$0xff]  ;;  %v184_v47 = vld [vmem:[#allocation2 + $0x1a0] sm:$0xff] }
  0x1d   :  { %222 = vmatprep.subr.mxu1 %v149_v18  ;;  %v183_v48 = vld [vmem:[#allocation2 + $0x198] sm:$0xff]  ;;  %v182_v49 = vld [vmem:[#allocation2 + $0x190] sm:$0xff]  ;;  %v181_v50 = vld [vmem:[#allocation2 + $0x188] sm:$0xff] }
  0x1e   :  { %223 = vmatpush1.msra.mxu1 %v148_v19  ;;  %v180_v51 = vld [vmem:[#allocation2 + $0x180] sm:$0xff]  ;;  %v179_v52 = vld [vmem:[#allocation2 + $0x178] sm:$0xff]  ;;  %v178_v53 = vld [vmem:[#allocation2 + $0x170] sm:$0xff] }
  0x1f   :  { %224 = vmatprep.subr.mxu1 %v147_v20  ;;  %v177_v54 = vld [vmem:[#allocation2 + $0x168] sm:$0xff]  ;;  %v176_v55 = vld [vmem:[#allocation2 + $0x160] sm:$0xff]  ;;  %v175_v56 = vld [vmem:[#allocation2 + $0x158] sm:$0xff] }
  0x20   :  { %225 = vmatpush1.msra.mxu1 %v146_v21  ;;  %v174_v57 = vld [vmem:[#allocation2 + $0x150] sm:$0xff]  ;;  %v173_v58 = vld [vmem:[#allocation2 + $0x148] sm:$0xff]  ;;  %v172_v59 = vld [vmem:[#allocation2 + $0x140] sm:$0xff] }
  0x21   :  { %226 = vmatprep.subr.mxu1 %v145_v22  ;;  %v171_v60 = vld [vmem:[#allocation2 + $0x138] sm:$0xff]  ;;  %v170_v61 = vld [vmem:[#allocation2 + $0x130] sm:$0xff]  ;;  %v169_v62 = vld [vmem:[#allocation2 + $0x128] sm:$0xff] }
  0x22   :  { %227 = vmatpush1.msra.mxu1 %v144_v23  ;;  %v168_v63 = vld [vmem:[#allocation2 + $0x120] sm:$0xff]  ;;  %v167_v0 = vld [vmem:[#allocation2 + $0x118] sm:$0xff]  ;;  %v166_v1 = vld [vmem:[#allocation2 + $0x110] sm:$0xff] }
  0x23   :  { %228 = vmatprep.subr.mxu1 %v143_v24  ;;  %v165_v2 = vld [vmem:[#allocation2 + $0x108] sm:$0xff]  ;;  %v164_v3 = vld [vmem:[#allocation2 + $0x100] sm:$0xff]  ;;  %v312_v4 = vld [vmem:[%s629_s5 + $0xf8] sm:$0xff] }
  0x24   :  { %229 = vmatpush1.msra.mxu1 %v142_v25  ;;  %v296_v5 = vld [vmem:[%s629_s5 + $0x78] sm:$0xff]  ;;  %v311_v6 = vld [vmem:[%s629_s5 + $0xf0] sm:$0xff]  ;;  %399 = vmatprep.subr.mxu0 %v312_v4  ;;  %v310_v8 = vld [vmem:[%s629_s5 + $0xe8] sm:$0xff] }
  0x25   :  { %230 = vmatprep.subr.mxu1 %v141_v26  ;;  %v295_v7 = vld [vmem:[%s629_s5 + $0x70] sm:$0xff]  ;;  %400 = vmatpush3.msra.mxu0 %v296_v5  ;;  %v294_v9 = vld [vmem:[%s629_s5 + $0x68] sm:$0xff]  ;;  %v309_v10 = vld [vmem:[%s629_s5 + $0xe0] sm:$0xff] }
  0x26   :  { %231 = vmatpush1.msra.mxu1 %v140_v27  ;;  %401 = vmatprep.subr.mxu0 %v311_v6  ;;  %v293_v11 = vld [vmem:[%s629_s5 + $0x60] sm:$0xff]  ;;  %v308_v12 = vld [vmem:[%s629_s5 + $0xd8] sm:$0xff]  ;;  %v307_v14 = vld [vmem:[%s629_s5 + $0xd0] sm:$0xff] }
  0x27   :  { %232 = vmatprep.subr.mxu1 %v139_v28  ;;  %402 = vmatpush3.msra.mxu0 %v295_v7  ;;  %v292_v13 = vld [vmem:[%s629_s5 + $0x58] sm:$0xff]  ;;  %v291_v15 = vld [vmem:[%s629_s5 + $0x50] sm:$0xff]  ;;  %v306_v16 = vld [vmem:[%s629_s5 + $0xc8] sm:$0xff]  ;;  %v45_v28 = vlaneseq }
  0x28   :  { %233 = vmatpush1.msra.mxu1 %v138_v29  ;;  %403 = vmatprep.subr.mxu0 %v310_v8  ;;  %v290_v17 = vld [vmem:[%s629_s5 + $0x48] sm:$0xff]  ;;  %v305_v18 = vld [vmem:[%s629_s5 + $0xc0] sm:$0xff]  ;;  %v304_v20 = vld [vmem:[%s629_s5 + $0xb8] sm:$0xff] }
  0x29   :  { %234 = vmatprep.subr.mxu1 %v137_v30  ;;  %404 = vmatpush3.msra.mxu0 %v294_v9  ;;  %v289_v19 = vld [vmem:[%s629_s5 + $0x40] sm:$0xff]  ;;  %v288_v21 = vld [vmem:[%s629_s5 + $0x38] sm:$0xff]  ;;  %v303_v22 = vld [vmem:[%s629_s5 + $0xb0] sm:$0xff]  ;;  %v46_v29 = vshrl.u32 %v45_v28, 7 }
  0x2a   :  { %235 = vmatpush1.msra.mxu1 %v136_v31  ;;  %405 = vmatprep.subr.mxu0 %v309_v10  ;;  %v287_v23 = vld [vmem:[%s629_s5 + $0x30] sm:$0xff]  ;;  %v302_v24 = vld [vmem:[%s629_s5 + $0xa8] sm:$0xff]  ;;  %v301_v26 = vld [vmem:[%s629_s5 + $0xa0] sm:$0xff] }
  0x2b   :  { %236 = vmatprep.subr.mxu1 %v135_v32  ;;  %406 = vmatpush3.msra.mxu0 %v293_v11  ;;  %v286_v25 = vld [vmem:[%s629_s5 + $0x28] sm:$0xff]  ;;  %v285_v27 = vld [vmem:[%s629_s5 + $0x20] sm:$0xff]  ;;  %v47_v30 = vsub.s32 0, %v46_v29  ;;  %v51_v32 = vsub.s32 1, %v46_v29 }
  0x2c   :  { %237 = vmatpush1.msra.mxu1 %v134_v33  ;;  %407 = vmatprep.subr.mxu0 %v308_v12  ;;  %v43_v31 = vld [vmem:[%s626_s2] sm:$0x3] }
  0x2d   :  { %238 = vmatprep.subr.mxu1 %v133_v34  ;;  %408 = vmatpush3.msra.mxu0 %v292_v13  ;;  %v48_v33 = vrot.slane %v43_v31, %v47_v30  ;;  %v52_v34 = vrot.slane %v43_v31, %v51_v32 }
  0x2e   :  { %239 = vmatpush1.msra.mxu1 %v132_v35  ;;  %409 = vmatprep.subr.mxu0 %v307_v14 }
  0x2f   :  { %240 = vmatprep.subr.mxu1 %v195_v36  ;;  %410 = vmatpush3.msra.mxu0 %v291_v15 }
  0x30   :  { %241 = vmatpush2.msra.mxu1 %v194_v37  ;;  %411 = vmatprep.subr.mxu0 %v306_v16 }
  0x31   :  { %242 = vmatprep.subr.mxu1 %v193_v38  ;;  %412 = vmatpush3.msra.mxu0 %v290_v17 }
  0x32   :  { %243 = vmatpush2.msra.mxu1 %v192_v39  ;;  %413 = vmatprep.subr.mxu0 %v305_v18 }
  0x33   :  { %244 = vmatprep.subr.mxu1 %v191_v40  ;;  %414 = vmatpush3.msra.mxu0 %v289_v19 }
  0x34   :  { %245 = vmatpush2.msra.mxu1 %v190_v41  ;;  %415 = vmatprep.subr.mxu0 %v304_v20  ;;  %v300_v41 = vld [vmem:[%s629_s5 + $0x98] sm:$0xff] }
  0x35   :  { %246 = vmatprep.subr.mxu1 %v189_v42  ;;  %416 = vmatpush3.msra.mxu0 %v288_v21  ;;  %v284_v42 = vld [vmem:[%s629_s5 + $0x18] sm:$0xff] }
  0x36   :  { %247 = vmatpush2.msra.mxu1 %v188_v43  ;;  %417 = vmatprep.subr.mxu0 %v303_v22  ;;  %v299_v43 = vld [vmem:[%s629_s5 + $0x90] sm:$0xff] }
  0x37   :  { %248 = vmatprep.subr.mxu1 %v187_v44  ;;  %418 = vmatpush3.msra.mxu0 %v287_v23  ;;  %v283_v44 = vld [vmem:[%s629_s5 + $0x10] sm:$0xff] }
  0x38   :  { %249 = vmatpush2.msra.mxu1 %v186_v45  ;;  %419 = vmatprep.subr.mxu0 %v302_v24  ;;  %v298_v45 = vld [vmem:[%s629_s5 + $0x88] sm:$0xff] }
  0x39   :  { %250 = vmatprep.subr.mxu1 %v185_v46  ;;  %420 = vmatpush3.msra.mxu0 %v286_v25  ;;  %v282_v46 = vld [vmem:[%s629_s5 + $0x8] sm:$0xff] }
  0x3a   :  { %251 = vmatpush2.msra.mxu1 %v184_v47  ;;  %421 = vmatprep.subr.mxu0 %v301_v26  ;;  %v297_v47 = vld [vmem:[%s629_s5 + $0x80] sm:$0xff] }
  0x3b   :  { %252 = vmatprep.subr.mxu1 %v183_v48  ;;  %422 = vmatpush3.msra.mxu0 %v285_v27  ;;  %v281_v48 = vld [vmem:[%s629_s5] sm:$0xff] }
  0x3c   :  { %253 = vmatpush2.msra.mxu1 %v182_v49  ;;  %423 = vmatprep.subr.mxu0 %v300_v41  ;;  %v196_v49 = vld [vmem:[%s628_s4] sm:$0x3] }
  0x3d   :  { %254 = vmatprep.subr.mxu1 %v181_v50  ;;  %424 = vmatpush3.msra.mxu0 %v284_v42  ;;  %v201_v50 = vrot.slane %v196_v49, %v47_v30 }
  0x3e   :  { %255 = vmatpush2.msra.mxu1 %v180_v51  ;;  %425 = vmatprep.subr.mxu0 %v299_v43  ;;  %v205_v51 = vrot.slane %v196_v49, %v51_v32 }
  0x3f   :  { %256 = vmatprep.subr.mxu1 %v179_v52  ;;  %426 = vmatpush3.msra.mxu0 %v283_v44 }
  0x40   :  { %257 = vmatpush2.msra.mxu1 %v178_v53  ;;  %427 = vmatprep.subr.mxu0 %v298_v45 }
  0x41   :  { %258 = vmatprep.subr.mxu1 %v177_v54  ;;  %428 = vmatpush3.msra.mxu0 %v282_v46 }
  0x42   :  { %259 = vmatpush2.msra.mxu1 %v176_v55  ;;  %429 = vmatprep.subr.mxu0 %v297_v47 }
  0x43   :  { %260 = vmatprep.subr.mxu1 %v175_v56  ;;  %430 = vmatpush3.msra.mxu0 %v281_v48 }
  0x44   :  { %261 = vmatpush2.msra.mxu1 %v174_v57 }
  0x45   :  { %262 = vmatprep.subr.mxu1 %v173_v58 }
  0x46   :  { %263 = vmatpush2.msra.mxu1 %v172_v59  ;;  %v398_v59 = vld [vmem:[%s630_s6] ss:$0 sm:$0xff] }
  0x47   :  { %264 = vmatprep.subr.mxu1 %v171_v60 }
  0x48   :  { %265 = vmatpush2.msra.mxu1 %v170_v61 }
  0x49   :  { %266 = vmatprep.subr.mxu1 %v169_v62 }
  0x4a   :  { %267 = vmatpush2.msra.mxu1 %v168_v63 }
  0x4b   :  { %268 = vmatprep.subr.mxu1 %v167_v0 }
  0x4c   :  { %269 = vmatpush2.msra.mxu1 %v166_v1 }
  0x4d   :  { %270 = vmatprep.subr.mxu1 %v165_v2 }
  0x4e   :  { %271 = vmatpush2.msra.mxu1 %v164_v3 }
  0xd0   :  { %v125_v35 = vpop.f32.mrf.mxu0 }
  0xd1   :  { %v126_v36 = vadd.f32 %v125_v35, %v48_v33 }
  0xd2   :  { %v127_v37 = vpop.f32.mrf.mxu0 }
  0xd3   :  { %v128_v38 = vadd.f32 %v127_v37, %v52_v34  ;;  %v130_v40 = vmax.f32 %v126_v36, 0.0 }
  0xd5   :  { %v131_v39 = vmax.f32 %v128_v38, 0.0 }
  0xd7   :  { %272 = vmatprep.mubr.f32.mxu1 %v131_v39 }
  0xd8   :  { %273 = vmatmul.mubr.f32.vlgmr.msra.gmra.mxu1 %v130_v40 }
 0x198   :  { %v274_v52 = vpop.f32.mrf.mxu1 }
 0x199   :  { %v275_v53 = vadd.f32 %v274_v52, %v201_v50 }
 0x19a   :  { %v276_v54 = vpop.f32.mrf.mxu1 }
 0x19b   :  { %v277_v55 = vadd.f32 %v276_v54, %v205_v51  ;;  %v279_v57 = vmax.f32 %v275_v53, 0.0 }
 0x19d   :  { %v280_v56 = vmax.f32 %v277_v55, 0.0 }
 0x19f   :  { %384 = vmatprep.mubr.f32.mxu0 %v280_v56 }
 0x1a0   :  { %385 = vmatmul.mubr.f32.vlgmr.msra.gmra.mxu0 %v279_v57 }
 0x260   :  { %v431_v58 = vpop.f32.mrf.mxu0 }
 0x262   :  { %v432_v60 = vpop.f32.mrf.mxu0 }
 0x263   :  { %v433_v61 = vadd.f32 %v432_v60, %v431_v58 }
 0x265   :  { %v387_v62 = vadd.f32 %v433_v61, %v398_v59 }
 0x267   :  { %391 = vst.msk [vmem:[%s631_s7] sm:$0xff] %vm390_vm1, %v387_v62 }
 0x268   :  { %396 = vsyncpa [#allocation3], 1 }

</bundles_post_ra>
